<compile_context>
chip_gen: v7x
topology: tpu7x:2x2x1
jax: 0.10.0
libtpu: 0.0.40
codegen_flags: <defaults>
</compile_context>

<pallas_src>
import jax
import jax.numpy as jnp
from jax import lax
from jax.experimental import pallas as pl
from jax.experimental.pallas import tpu as pltpu

OUT_DIM = 6  # Emission.__init__ forces layers[0] bias = [1,0,0,0,1,0] -> fcs[1] == 6


def emission_kernel(x_ref, w_ref, b_ref, o_ref):
    # Linear: x @ W^T + b (W pre-transposed to (H, OUT) on the host).
    h = jnp.dot(x_ref[...], w_ref[...], preferred_element_type=jnp.float32)
    h = h + b_ref[...]                       # (TILE_N, OUT) + (1, OUT) broadcast
    t = jnp.tanh(h)                          # nn.Tanh()

    # forward() masking for OUT_DIM == 6:
    #   cols 0, 4     -> clamp(t, 0, 1)
    #   cols 1,2,3,5  -> t unchanged
    col = lax.broadcasted_iota(jnp.int32, t.shape, dimension=1)
    clamp_cols = (col == 0) | (col == 4)
    o_ref[...] = jnp.where(clamp_cols, jnp.clip(t, 0.0, 1.0), t).astype(o_ref.dtype)


def _choose_tile_n(N, H, budget_bytes=8 << 20):
    """Rows per tile: double-buffered f32 x-tile stays well under the smallest
    scoped-VMEM default (16 MiB on v5e), multiple of 8, capped at 1024."""
    max_rows_by_vmem = max(8, budget_bytes // max(1, 2 * H * 4))
    n_rounded = ((N + 7) // 8) * 8
    tile = min(1024, max_rows_by_vmem, n_rounded)
    return max(8, (tile // 8) * 8)


def emission_forward(x, w_t, b_row):
    """x: (N, H) f32, w_t: (H, OUT) f32, b_row: (1, OUT) f32 -> (N, OUT) f32."""
    N, H = x.shape
    Hw, O = w_t.shape
    assert H == Hw and b_row.shape == (1, O)

    tile_n = _choose_tile_n(N, H)
    grid = (pl.cdiv(N, tile_n),)

    cost = pl.CostEstimate(
        flops=2 * N * H * O,
        transcendentals=N * O,
        bytes_accessed=4 * (N * H + H * O + O + N * O),
    )

    return pl.pallas_call(
        emission_kernel,
        out_shape=jax.ShapeDtypeStruct((N, O), jnp.float32),
        grid=grid,
        in_specs=[
            pl.BlockSpec((tile_n, H), lambda i: (i, 0)),   # streamed row tiles
            pl.BlockSpec((H, O), lambda i: (0, 0)),        # weight: VMEM-resident
            pl.BlockSpec((1, O), lambda i: (0, 0)),        # bias:   VMEM-resident
        ],
        out_specs=pl.BlockSpec((tile_n, O), lambda i: (i, 0)),
        compiler_params=pltpu.CompilerParams(
            dimension_semantics=("parallel",),
        ),
        cost_estimate=cost,
    )(x, w_t, b_row)


def init_emission_params(fcs):
    """Replicates Emission.__init__ for fcs = [H, 6]:
       single nn.Linear(H, 6) with weight zeroed and bias = [1,0,0,0,1,0]."""
    assert len(fcs) == 2 and fcs[1] == OUT_DIM
    H = fcs[0]
    w = jnp.zeros((OUT_DIM, H), dtype=jnp.float32)  # torch Linear layout (out, in)
    b = jnp.array([1.0, 0.0, 0.0, 0.0, 1.0, 0.0], dtype=jnp.float32)
    return w, b


def _reference(x, w, b):
    """Pure-JAX reference matching the exact torch semantics."""
    t = jnp.tanh(x @ w.T + b)
    ref = jnp.zeros_like(t)
    idx = jnp.array([1, 2, 3, 5])
    ref = ref.at[:, idx].set(t[:, idx])
    ref = ref.at[:, 0].set(jnp.clip(t[:, 0], 0.0, 1.0))
    ref = ref.at[:, 4].set(jnp.clip(t[:, 4], 0.0, 1.0))
    return ref


if __name__ == "__main__":
    key = jax.random.PRNGKey(0)
    H = 32
    fcs = [H, OUT_DIM]

    # Case 1: module's default init (zero weight, bias = [1,0,0,0,1,0]).
    k1, k2, k3 = jax.random.split(key, 3)
    x1 = jax.random.normal(k1, (8, H), dtype=jnp.float32)
    w0, b0 = init_emission_params(fcs)
    out1 = jax.block_until_ready(emission_forward(x1, w0.T, b0.reshape(1, OUT_DIM)))
    ref1 = _reference(x1, w0, b0)
    assert out1.shape == (8, OUT_DIM) and out1.dtype == jnp.float32
    assert jnp.allclose(out1, ref1, atol=1e-5)

    # Case 2: random weights, N not a multiple of the tile size (exercises
    # the matmul path and the padded last grid block).
    N2 = 20
    x2 = jax.random.normal(k1, (N2, H), dtype=jnp.float32)
    w2 = 0.1 * jax.random.normal(k2, (OUT_DIM, H), dtype=jnp.float32)
    b2 = 0.1 * jax.random.normal(k3, (OUT_DIM,), dtype=jnp.float32)
    out2 = jax.block_until_ready(emission_forward(x2, w2.T, b2.reshape(1, OUT_DIM)))
    ref2 = _reference(x2, w2, b2)
    assert out2.shape == (N2, OUT_DIM) and out2.dtype == jnp.float32
    assert jnp.allclose(out2, ref2, atol=1e-5)

    print("KERNEL_OK")
</pallas_src>

<mosaic_0001>
module attributes {stable_mosaic.version = 11 : i64} {
  func.func @emission_kernel(%arg0: i32, %arg1: memref<8x32xf32, #tpu.memory_space<vmem>>, %arg2: memref<32x6xf32, #tpu.memory_space<vmem>>, %arg3: memref<1x6xf32, #tpu.memory_space<vmem>>, %arg4: memref<8x6xf32, #tpu.memory_space<vmem>>) attributes {dimension_semantics = [#tpu.dimension_semantics<parallel>], iteration_bounds = array<i64: 1>, scalar_prefetch = 0 : i64, scratch_operands = 0 : i64, tpu.core_type = #tpu.core_type<tc>, window_params = [{transform_indices = @transform_0, window_bounds = array<i64: 8, 32>}, {pipeline_mode = #tpu.pipeline_mode<synchronous>, transform_indices = @transform_1, window_bounds = array<i64: 32, 6>}, {pipeline_mode = #tpu.pipeline_mode<synchronous>, transform_indices = @transform_2, window_bounds = array<i64: 1, 6>}, {transform_indices = @transform_3, window_bounds = array<i64: 8, 6>}]} {
    %c0 = arith.constant 0 : index
    %c0_0 = arith.constant 0 : index
    %0 = vector.load %arg1[%c0, %c0_0] : memref<8x32xf32, #tpu.memory_space<vmem>>, vector<8x32xf32>
    %c0_1 = arith.constant 0 : index
    %c0_2 = arith.constant 0 : index
    %1 = vector.load %arg2[%c0_1, %c0_2] : memref<32x6xf32, #tpu.memory_space<vmem>>, vector<32x6xf32>
    %cst = arith.constant dense<0.000000e+00> : vector<8x6xf32>
    %2 = tpu.matmul %0, %1, %cst {dimension_numbers = #tpu.dot_dimension_numbers<[1], [0], [0], [1], [0, 0, 1, 1], [], []>} : vector<8x32xf32>, vector<32x6xf32>, vector<8x6xf32> -> vector<8x6xf32>
    %c0_3 = arith.constant 0 : index
    %c0_4 = arith.constant 0 : index
    %3 = vector.load %arg3[%c0_3, %c0_4] : memref<1x6xf32, #tpu.memory_space<vmem>>, vector<1x6xf32>
    %4 = vector.broadcast %3 : vector<1x6xf32> to vector<8x6xf32>
    %5 = arith.addf %2, %4 : vector<8x6xf32>
    %6 = math.tanh %5 : vector<8x6xf32>
    %7 = tpu.iota {dimensions = array<i32: 1>} : vector<8x6xi32>
    %c0_i32 = arith.constant 0 : i32
    %8 = vector.broadcast %c0_i32 : i32 to vector<8x6xi32>
    %9 = arith.cmpi eq, %7, %8 : vector<8x6xi32>
    %c4_i32 = arith.constant 4 : i32
    %10 = vector.broadcast %c4_i32 : i32 to vector<8x6xi32>
    %11 = arith.cmpi eq, %7, %10 : vector<8x6xi32>
    %12 = arith.ori %9, %11 : vector<8x6xi1>
    %cst_5 = arith.constant 0.000000e+00 : f32
    %cst_6 = arith.constant 1.000000e+00 : f32
    %13 = vector.broadcast %cst_5 : f32 to vector<8x6xf32>
    %14 = arith.maximumf %13, %6 : vector<8x6xf32>
    %15 = vector.broadcast %cst_6 : f32 to vector<8x6xf32>
    %16 = arith.minimumf %15, %14 : vector<8x6xf32>
    %17 = arith.select %12, %16, %6 : vector<8x6xi1>, vector<8x6xf32>
    %c0_7 = arith.constant 0 : index
    %c0_8 = arith.constant 0 : index
    %18 = vector.load %arg4[%c0_7, %c0_8] : memref<8x6xf32, #tpu.memory_space<vmem>>, vector<8x6xf32>
    tpu.vector_store %arg4[%c0_7, %c0_8], %17 {strides = array<i32>} : memref<8x6xf32, #tpu.memory_space<vmem>>, vector<8x6xf32>,
    return
  }
  func.func @transform_0(%arg0: i32) -> (i32, i32) {
    %c0_i32 = arith.constant 0 : i32
    %c0_i32_0 = arith.constant 0 : i32
    return %arg0, %c0_i32 : i32, i32
  }
  func.func @transform_1(%arg0: i32) -> (i32, i32) {
    %c0_i32 = arith.constant 0 : i32
    %c0_i32_0 = arith.constant 0 : i32
    %c0_i32_1 = arith.constant 0 : i32
    return %c0_i32, %c0_i32_0 : i32, i32
  }
  func.func @transform_2(%arg0: i32) -> (i32, i32) {
    %c0_i32 = arith.constant 0 : i32
    %c0_i32_0 = arith.constant 0 : i32
    %c0_i32_1 = arith.constant 0 : i32
    return %c0_i32, %c0_i32_0 : i32, i32
  }
  func.func @transform_3(%arg0: i32) -> (i32, i32) {
    %c0_i32 = arith.constant 0 : i32
    %c0_i32_0 = arith.constant 0 : i32
    return %arg0, %c0_i32 : i32, i32
  }
}

</mosaic_0001>

<bundles_post_ra>
// kernel: tpu_custom_call.1
= control target key start
LH: loop header
LB: loop body
LE: loop exit
PB: predicated region body
PF: predicated region fallthrough
CT: control target
= control target key end

     0   :  { %v180_v3 = vmov 0.0|0.0   ;;  %vm181_vm0 = vmmov 0   ;;  %v182_v6 = vmov 0.0   ;;  %s234_s0 = inlined_call_operand.vmem [shape: f32[8,32], index: 0, kind: input, shape index: {}]   ;;  %s235_s1 = inlined_call_operand.vmem [shape: f32[32,6], index: 1, kind: input, shape index: {}]   ;;  %s236_s2 = inlined_call_operand.vmem [shape: f32[1,6], index: 2, kind: input, shape index: {}]   ;;  %s237_s3 = inlined_call_operand.hbm [shape: f32[8,6], index: 3, kind: output, shape index: {}]  }
   0x1   :  { %v16_v0 = vld [vmem:[%s235_s1] sm:$0xff]  ;;  %v17_v1 = vld [vmem:[%s235_s1 + $0x8] sm:$0xff]  ;;  %v18_v2 = vld [vmem:[%s235_s1 + $0x10] sm:$0xff]  ;;  %144 = vmatprep.subr.bf16.mxu0 %v180_v3  ;;  %141 = vmatprep.mubr.msk.f32.mxu0 %vm181_vm0, %v182_v6 }
   0x2   :  { %v145_v4 = vpack.c.bf16 %v17_v1, %v16_v0  ;;  %v19_v5 = vld [vmem:[%s235_s1 + $0x18] sm:$0xff] }
   0x3   :  { %8 = vsyncpa [#allocation3], 0  ;;  %v148_v7 = vpack.c.bf16 %v19_v5, %v18_v2  ;;  %v15_v8 = vld [vmem:[%s234_s0] sm:$0xff]  ;;  %vm27_vm1 = vcmask 261120   ;;  %v102_v13 = vlaneseq  ;;  %s183_s1 = smov [#allocation2]   ;;  %vm110_vm5 = vcmask 48128  }
   0x4   :  { %146 = vmatpush3.bf16.msra.mxu0 %v145_v4  ;;  %v126_v9 = vld [vmem:[%s236_s2] ss:$0 sm:$0xff]  ;;  %s118_s24 = sshll.u32 %s183_s1, 4  ;;  %s119_s24 = int_to_ptr.vmem [resolvable:$true] %s118_s24 }
   0x5   :  { %147 = vmatprep.subr.bf16.mxu0 %v180_v3  ;;  %v103_v14 = vand.u32 127, %v102_v13  ;;  %s156_s0 = scalar_lea.vmem %s119_s24, 128  ;;  %p161_p1 = scmp.lt.s32.totalorder %s119_s24, %s119_s24 }
   0x6   :  { %p157_p0 = scmp.ne.s32.totalorder %s119_s24, %s156_s0  ;;  %p162_p2 = scmp.lt.s32.totalorder %s156_s0, %s156_s0 }
   0x7   :  { %vm104_vm2 = vcmp.eq.s32.totalorder %v103_v14, 0  ;;  %vm105_vm3 = vcmp.eq.s32.totalorder %v103_v14, 4 }
   0x8   :  { %149 = vmatpush3.bf16.msra.mxu0 %v148_v7  ;;  %vm106_vm4 = vmor %vm104_vm2, %vm105_vm3  ;;  %p163_p3 = por %p162_p2, %p161_p1 }
   0xa   :  { %p164_p4 = pnand %p163_p3, %p157_p0 }
   0xb   :  { %142 = vmatmul.mubr.msk.f32.vlgmr.msra.gmra.mrb[0].mxu0 %vm27_vm1, %v15_v8 }
  0xde   :  { %v97_v10 = vpop.f32.mrb[0].mxu0 }
  0xdf   :  { %v98_v11 = vadd.f32 %v126_v9, %v97_v10  ;;  %v143_v12 = vpop.f32.mrb[1].mxu0 }
  0xe1   :  { %154 = vtanh.f32 %v98_v11 }
  0xeb   :  { %v155_v15 = vpop.eup %154 }
  0xec   :  { %v107_v16 = vmax.f32 %v155_v15, 0.0 }
  0xee   :  { %v108_v17 = vmin.f32 %v107_v16, 1.0 }
  0xf0   :  { %v109_v18 = vsel %vm106_vm4, %v108_v17, %v155_v15 }
  0xf1   :  { %111 = vst.msk [vmem:[#allocation2] sm:$0xff] %vm110_vm5, %v109_v18 }
  0xf2   :  { %167 = shalt.err (!%p164_p4)
}
  0xf3   :  { %s168_s26 = scalar_lea.hbm %s237_s3, 128 }
  0xf4   :  { %p169_p5 = scmp.ne.s32.totalorder %s237_s3, %s168_s26  ;;  %p172_p6 = scmp.lt.u32.totalorder %s168_s26, %s237_s3 }
  0xf6   :  { %p174_p7 = pnand %p172_p6, %p169_p5 }
  0xf8   :  { %177 = shalt.err (!%p174_p7)
}
  0xf9   :  { %121 = dma.vmem_to_hbm [thread:$0]  %s119_s24, 128, %s237_s3, [#allocation3]  }
  0xfa   :  { %178 = dma.done.wait [#allocation3], 128  }
  0xfb   :  { %179 = vsyncadd [#allocation3], 4294967168 }
  0xfc   :  { %125 = vsyncpa [#allocation3], 1 }

</bundles_post_ra>
